<compile_context>
chip_gen: v5e
topology: v5e:2x2
jax: 0.10.0
libtpu: 0.0.40
codegen_flags: <defaults>
</compile_context>

<pallas_src>
import functools

import jax
import jax.numpy as jnp
import numpy as np
from jax import lax
from jax.experimental import pallas as pl
from jax.experimental.pallas import tpu as pltpu

K_DIM = 4  # relative-state feature dim (first 4 features of the observation)


def _actor_kernel(state_ref, eps_ref,
                  wqkv_ref, w1a_ref, w1s_ref, b1_ref,
                  w2_ref, b2_ref, wh_ref, bh_ref,
                  out_ref,
                  *, num_heads, out_dim, log_std_min, log_std_max,
                  compute_dtype):
    bb, T, in_dim = state_ref.shape
    M = bb * T
    H = num_heads
    dt = compute_dtype

    def mm(a, b):  # MXU matmul, f32 accumulation
        return jnp.dot(a.astype(dt), b.astype(dt),
                       preferred_element_type=jnp.float32)

    state = state_ref[...].reshape(M, in_dim)        # (M, IN)
    eps = eps_ref[...].reshape(M, out_dim)           # (M, OUT)

    # Packed projection: columns = [q_all | khat_all | vhat_all], each (M, 4H).
    qkv = mm(state, wqkv_ref[...])                   # (M, 12H)

    # Diagonal (self-pair) additive mask, computed once outside the head loop.
    ii = lax.broadcasted_iota(jnp.int32, (T, T), 0)
    jj = lax.broadcasted_iota(jnp.int32, (T, T), 1)
    neg_mask = jnp.where(ii == jj, -1e30, 0.0).astype(jnp.float32)   # (T, T)

    inv_sqrt_k = 1.0 / (K_DIM ** 0.5)

    # First MLP layer: the [attn, state] concat is fused as
    #   x1 = state @ W1_state + sum_h attn_h @ W1_attn[h] + b1
    x1 = mm(state, w1s_ref[...]) + b1_ref[...]       # (M, HID)

    for h in range(H):                               # static unroll, H small
        q_h = qkv[:, h * K_DIM:(h + 1) * K_DIM].reshape(bb, T, K_DIM)
        k_h = qkv[:, (H + h) * K_DIM:(H + h + 1) * K_DIM].reshape(bb, T, K_DIM)
        v_h = qkv[:, (2 * H + h) * K_DIM:(2 * H + h + 1) * K_DIM].reshape(bb, T, K_DIM)

        # rank-1 decomposition: per-row constant term cancels in softmax.
        logits = jnp.einsum('bic,bjc->bij', q_h, k_h,
                            preferred_element_type=jnp.float32) * inv_sqrt_k
        logits = logits + neg_mask[None, :, :]

        m = jnp.max(logits, axis=-1, keepdims=True)
        e = jnp.exp(logits - m)                      # diag underflows to 0
        w = e * pl.reciprocal(jnp.sum(e, axis=-1, keepdims=True), approx=True)

        # out_h[i] = sum_{j != i} w[i,j] (vhat[j] - vhat[i]) = (w @ vhat)[i] - vhat[i]
        out_h = jnp.einsum('bij,bjc->bic', w, v_h,
                           preferred_element_type=jnp.float32) - v_h
        x1 = x1 + mm(out_h.reshape(M, K_DIM), w1a_ref[h])

    # MLP (num_layers = 2: Linear+ReLU, Linear+ReLU)
    x1 = jnp.maximum(x1, 0.0)
    x2 = jnp.maximum(mm(x1, w2_ref[...]) + b2_ref[...], 0.0)

    # Packed policy heads: [mu | log_std_raw], both go through tanh.
    heads = jnp.tanh(mm(x2, wh_ref[...]) + bh_ref[...])   # (M, 2*OUT)
    mu = heads[:, :out_dim]
    log_std = log_std_min + 0.5 * (log_std_max - log_std_min) * (heads[:, out_dim:] + 1.0)
    std = jnp.exp(log_std)

    # Reparameterised tanh-Gaussian sample.
    z = mu + std * eps
    action = jnp.tanh(z)
    # Normal(mu, std).log_prob(z) with z = mu + std*eps
    log_prob = (-0.5 * eps * eps - log_std - 0.5 * jnp.log(2.0 * jnp.pi)
                - jnp.log(1.0 - action * action + 1e-7))
    logp = jnp.sum(log_prob, axis=-1, keepdims=True)       # (M, 1)

    packed = jnp.concatenate([action, logp], axis=-1)      # (M, OUT+1)
    out_ref[...] = packed.reshape(bb, T, out_dim + 1)


def rel_transformer_actor(state, eps, params, *, num_heads=3,
                          log_std_min=-20.0, log_std_max=2.0,
                          batch_block=None, compute_dtype=jnp.float32):
    B, T, IN = state.shape
    OUT = params['mu_w'].shape[0]
    H = num_heads
    h4 = K_DIM * H
    assert T >= 2, "relative attention requires at least 2 agents (T >= 2)"

    # Fold batch into the matmul M dimension; keep several grid steps when B
    # is large (megacore on v7x), whole batch in one step when tiny.
    if batch_block is None:
        bb = max(1, min(B, 512 // max(T, 1)))
        while B % bb:
            bb -= 1
    else:
        bb = batch_block
    assert B % bb == 0

    f32 = jnp.float32
    state = state.astype(f32)
    eps = eps.astype(f32)

    # ---- host-side weight packing (done once, pure layout plumbing) ----
    wq_t = jnp.asarray(params['wq'], f32).T                       # (IN, 4H)
    wk_t = jnp.zeros((IN, h4), f32).at[:K_DIM].set(jnp.asarray(params['wk'], f32).T)
    wv_t = jnp.zeros((IN, h4), f32).at[:K_DIM].set(jnp.asarray(params['wv'], f32).T)
    w_qkv = jnp.concatenate([wq_t, wk_t, wv_t], axis=1)           # (IN, 12H)

    w1_t = jnp.asarray(params['w1'], f32).T                       # (4H+IN, HID)
    HID = w1_t.shape[1]
    w1a = w1_t[:h4].reshape(H, K_DIM, HID)                        # attn part, per head
    w1s = w1_t[h4:]                                               # state part
    b1 = jnp.asarray(params['b1'], f32).reshape(1, -1)
    w2 = jnp.asarray(params['w2'], f32).T
    b2 = jnp.asarray(params['b2'], f32).reshape(1, -1)
    w_heads = jnp.concatenate([jnp.asarray(params['mu_w'], f32).T,
                               jnp.asarray(params['ls_w'], f32).T], axis=1)   # (HID, 2*OUT)
    b_heads = jnp.concatenate([jnp.asarray(params['mu_b'], f32),
                               jnp.asarray(params['ls_b'], f32)]).reshape(1, -1)

    weights = [w_qkv, w1a, w1s, b1, w2, b2, w_heads, b_heads]

    kernel = functools.partial(_actor_kernel, num_heads=H, out_dim=OUT,
                               log_std_min=log_std_min, log_std_max=log_std_max,
                               compute_dtype=compute_dtype)

    in_specs = [
        pl.BlockSpec((bb, T, IN), lambda i: (i, 0, 0)),
        pl.BlockSpec((bb, T, OUT), lambda i: (i, 0, 0)),
    ]
    for wgt in weights:  # weights: constant index map -> resident across steps
        in_specs.append(pl.BlockSpec(wgt.shape, lambda i, n=wgt.ndim: (0,) * n))

    out_shape = jax.ShapeDtypeStruct((B, T, OUT + 1), jnp.float32)
    out_specs = pl.BlockSpec((bb, T, OUT + 1), lambda i: (i, 0, 0))

    packed = pl.pallas_call(
        kernel,
        out_shape=out_shape,
        grid_spec=pltpu.PrefetchScalarGridSpec(
            num_scalar_prefetch=0,
            grid=(B // bb,),
            in_specs=in_specs,
            out_specs=out_specs,
        ),
        compiler_params=pltpu.CompilerParams(
            dimension_semantics=("parallel",),
            vmem_limit_bytes=32 * 1024 * 1024),
    )(state, eps, *weights)

    return packed[..., :OUT], packed[..., OUT:OUT + 1]


def init_params(key, in_dim, out_dim, num_heads=3, hidden_dim=256, init_w=0.003):
    """Deterministic synthetic parameters, torch-convention shapes (out, in)."""
    ks = jax.random.split(key, 12)

    def uni(k, shape, bound):
        return jax.random.uniform(k, shape, jnp.float32, -bound, bound)

    h4 = 4 * num_heads
    cat_dim = h4 + in_dim
    params = {
        'wq': uni(ks[0], (h4, in_dim), 1.0 / np.sqrt(in_dim)),
        'wk': uni(ks[1], (h4, 4), 0.5),
        'wv': uni(ks[2], (h4, 4), 0.5),
        'w1': uni(ks[3], (hidden_dim, cat_dim), 1.0 / np.sqrt(cat_dim)),
        'b1': uni(ks[4], (hidden_dim,), 1.0 / np.sqrt(cat_dim)),
        'w2': uni(ks[5], (hidden_dim, hidden_dim), 1.0 / np.sqrt(hidden_dim)),
        'b2': uni(ks[6], (hidden_dim,), 1.0 / np.sqrt(hidden_dim)),
        'mu_w': uni(ks[7], (out_dim, hidden_dim), init_w),
        'mu_b': uni(ks[8], (out_dim,), init_w),
        'ls_w': uni(ks[9], (out_dim, hidden_dim), init_w),
        'ls_b': uni(ks[10], (out_dim,), init_w),
    }
    return params


def reference(state, eps, params, num_heads=3, log_std_min=-20.0, log_std_max=2.0):
    """Pure-JAX transcription of the PyTorch forward (with explicit diagonal removal)."""
    b, t, _ = state.shape
    h, k = num_heads, 4
    x4 = state[:, :, :4]
    rel = x4[:, None, :, :] - x4[:, :, None, :]                   # (b, t, t, 4)
    idx = np.array([[j for j in range(t) if j != i] for i in range(t)])  # (t, t-1)
    rel = rel[:, np.arange(t)[:, None], idx, :]                   # (b, t, t-1, 4)

    q = (state @ params['wq'].T).reshape(b, t, h, k)
    kk = (rel.reshape(b, t * (t - 1), k) @ params['wk'].T).reshape(b, t, t - 1, h, k)
    vv = (rel.reshape(b, t * (t - 1), k) @ params['wv'].T).reshape(b, t, t - 1, h, k)

    logits = jnp.einsum('btjhc,bthc->btjh', kk, q) / np.sqrt(k)
    w = jax.nn.softmax(logits, axis=2)
    attn = jnp.einsum('btjh,btjhc->bthc', w, vv).reshape(b, t, h * k)

    x = jnp.concatenate([attn, state], axis=-1)
    x = jax.nn.relu(x @ params['w1'].T + params['b1'])
    x = jax.nn.relu(x @ params['w2'].T + params['b2'])
    mu = jnp.tanh(x @ params['mu_w'].T + params['mu_b'])
    log_std = jnp.tanh(x @ params['ls_w'].T + params['ls_b'])
    log_std = log_std_min + 0.5 * (log_std_max - log_std_min) * (log_std + 1.0)
    std = jnp.exp(log_std)
    z = mu + std * eps
    action = jnp.tanh(z)
    lp = (-0.5 * eps ** 2 - log_std - 0.5 * np.log(2.0 * np.pi)
          - jnp.log(1.0 - action ** 2 + 1e-7))
    return action, lp.sum(-1, keepdims=True)


if __name__ == "__main__":
    B, T, IN, OUT = 2, 8, 16, 2
    NUM_HEADS, HIDDEN = 3, 32

    key = jax.random.PRNGKey(0)
    k_state, k_eps, k_params = jax.random.split(key, 3)

    state = jax.random.normal(k_state, (B, T, IN), dtype=jnp.float32)
    eps = jax.random.normal(k_eps, (B, T, OUT), dtype=jnp.float32)
    params = init_params(k_params, IN, OUT, num_heads=NUM_HEADS, hidden_dim=HIDDEN)

    action, log_prob = rel_transformer_actor(state, eps, params, num_heads=NUM_HEADS)
    jax.block_until_ready((action, log_prob))

    # Sanity check against a pure-JAX reference of the PyTorch forward.
    ref_action, ref_logp = reference(state, eps, params, num_heads=NUM_HEADS)
    assert action.shape == (B, T, OUT) and log_prob.shape == (B, T, 1)
    np.testing.assert_allclose(np.asarray(action), np.asarray(ref_action),
                               rtol=2e-3, atol=2e-3)
    np.testing.assert_allclose(np.asarray(log_prob), np.asarray(ref_logp),
                               rtol=2e-3, atol=2e-3)

    print("KERNEL_OK")
</pallas_src>

<mosaic_0001>
module attributes {stable_mosaic.version = 11 : i64} {
  func.func @_actor_kernel(%arg0: i32, %arg1: memref<2x8x16xf32, #tpu.memory_space<vmem>>, %arg2: memref<2x8x2xf32, #tpu.memory_space<vmem>>, %arg3: memref<16x36xf32, #tpu.memory_space<vmem>>, %arg4: memref<3x4x32xf32, #tpu.memory_space<vmem>>, %arg5: memref<16x32xf32, #tpu.memory_space<vmem>>, %arg6: memref<1x32xf32, #tpu.memory_space<vmem>>, %arg7: memref<32x32xf32, #tpu.memory_space<vmem>>, %arg8: memref<1x32xf32, #tpu.memory_space<vmem>>, %arg9: memref<32x4xf32, #tpu.memory_space<vmem>>, %arg10: memref<1x4xf32, #tpu.memory_space<vmem>>, %arg11: memref<2x8x3xf32, #tpu.memory_space<vmem>>) attributes {dimension_semantics = [#tpu.dimension_semantics<parallel>], iteration_bounds = array<i64: 1>, scalar_prefetch = 0 : i64, scratch_operands = 0 : i64, tpu.core_type = #tpu.core_type<tc>, window_params = [{transform_indices = @transform_0, window_bounds = array<i64: 2, 8, 16>}, {transform_indices = @transform_1, window_bounds = array<i64: 2, 8, 2>}, {pipeline_mode = #tpu.pipeline_mode<synchronous>, transform_indices = @transform_2, window_bounds = array<i64: 16, 36>}, {pipeline_mode = #tpu.pipeline_mode<synchronous>, transform_indices = @transform_3, window_bounds = array<i64: 3, 4, 32>}, {pipeline_mode = #tpu.pipeline_mode<synchronous>, transform_indices = @transform_4, window_bounds = array<i64: 16, 32>}, {pipeline_mode = #tpu.pipeline_mode<synchronous>, transform_indices = @transform_5, window_bounds = array<i64: 1, 32>}, {pipeline_mode = #tpu.pipeline_mode<synchronous>, transform_indices = @transform_6, window_bounds = array<i64: 32, 32>}, {pipeline_mode = #tpu.pipeline_mode<synchronous>, transform_indices = @transform_7, window_bounds = array<i64: 1, 32>}, {pipeline_mode = #tpu.pipeline_mode<synchronous>, transform_indices = @transform_8, window_bounds = array<i64: 32, 4>}, {pipeline_mode = #tpu.pipeline_mode<synchronous>, transform_indices = @transform_9, window_bounds = array<i64: 1, 4>}, {transform_indices = @transform_10, window_bounds = array<i64: 2, 8, 3>}]} {
    %c0 = arith.constant 0 : index
    %c0_0 = arith.constant 0 : index
    %c0_1 = arith.constant 0 : index
    %0 = vector.load %arg1[%c0, %c0_0, %c0_1] : memref<2x8x16xf32, #tpu.memory_space<vmem>>, vector<2x8x16xf32>
    %1 = vector.shape_cast %0 : vector<2x8x16xf32> to vector<16x16xf32>
    %c0_2 = arith.constant 0 : index
    %c0_3 = arith.constant 0 : index
    %c0_4 = arith.constant 0 : index
    %2 = vector.load %arg2[%c0_2, %c0_3, %c0_4] : memref<2x8x2xf32, #tpu.memory_space<vmem>>, vector<2x8x2xf32>
    %3 = vector.shape_cast %2 : vector<2x8x2xf32> to vector<16x2xf32>
    %c0_5 = arith.constant 0 : index
    %c0_6 = arith.constant 0 : index
    %4 = vector.load %arg3[%c0_5, %c0_6] : memref<16x36xf32, #tpu.memory_space<vmem>>, vector<16x36xf32>
    %cst = arith.constant dense<0.000000e+00> : vector<16x36xf32>
    %5 = tpu.matmul %1, %4, %cst {dimension_numbers = #tpu.dot_dimension_numbers<[1], [0], [0], [1], [0, 0, 1, 1], [], []>} : vector<16x16xf32>, vector<16x36xf32>, vector<16x36xf32> -> vector<16x36xf32>
    %6 = tpu.iota {dimensions = array<i32: 0>} : vector<8x8xi32>
    %7 = tpu.iota {dimensions = array<i32: 1>} : vector<8x8xi32>
    %8 = arith.cmpi eq, %6, %7 : vector<8x8xi32>
    %cst_7 = arith.constant -1.000000e+30 : f32
    %cst_8 = arith.constant 0.000000e+00 : f32
    %9 = vector.broadcast %cst_7 : f32 to vector<8x8xf32>
    %10 = vector.broadcast %cst_8 : f32 to vector<8x8xf32>
    %11 = arith.select %8, %9, %10 : vector<8x8xi1>, vector<8x8xf32>
    %c0_9 = arith.constant 0 : index
    %c0_10 = arith.constant 0 : index
    %12 = vector.load %arg5[%c0_9, %c0_10] : memref<16x32xf32, #tpu.memory_space<vmem>>, vector<16x32xf32>
    %cst_11 = arith.constant dense<0.000000e+00> : vector<16x32xf32>
    %13 = tpu.matmul %1, %12, %cst_11 {dimension_numbers = #tpu.dot_dimension_numbers<[1], [0], [0], [1], [0, 0, 1, 1], [], []>} : vector<16x16xf32>, vector<16x32xf32>, vector<16x32xf32> -> vector<16x32xf32>
    %c0_12 = arith.constant 0 : index
    %c0_13 = arith.constant 0 : index
    %14 = vector.load %arg6[%c0_12, %c0_13] : memref<1x32xf32, #tpu.memory_space<vmem>>, vector<1x32xf32>
    %15 = vector.broadcast %14 : vector<1x32xf32> to vector<16x32xf32>
    %16 = arith.addf %13, %15 : vector<16x32xf32>
    %17 = vector.extract_strided_slice %5 {offsets = [0, 0], sizes = [16, 4], strides = [1, 1]} : vector<16x36xf32> to vector<16x4xf32>
    %18 = vector.shape_cast %17 : vector<16x4xf32> to vector<2x8x4xf32>
    %19 = vector.extract_strided_slice %5 {offsets = [0, 12], sizes = [16, 4], strides = [1, 1]} : vector<16x36xf32> to vector<16x4xf32>
    %20 = vector.shape_cast %19 : vector<16x4xf32> to vector<2x8x4xf32>
    %21 = vector.extract_strided_slice %5 {offsets = [0, 24], sizes = [16, 4], strides = [1, 1]} : vector<16x36xf32> to vector<16x4xf32>
    %22 = vector.shape_cast %21 : vector<16x4xf32> to vector<2x8x4xf32>
    "tpu.trace_start"() <{level = 10 : i32, message = "bic,bjc->bij"}> : () -> ()
    %cst_14 = arith.constant dense<0.000000e+00> : vector<2x8x8xf32>
    %23 = tpu.matmul %18, %20, %cst_14 {dimension_numbers = #tpu.dot_dimension_numbers<[2], [2], [1], [1], [0, 0, 0, 1, 1, 1], [0], [0]>} : vector<2x8x4xf32>, vector<2x8x4xf32>, vector<2x8x8xf32> -> vector<2x8x8xf32>
    "tpu.trace_stop"() : () -> ()
    %cst_15 = arith.constant 5.000000e-01 : f32
    %24 = vector.broadcast %cst_15 : f32 to vector<2x8x8xf32>
    %25 = arith.mulf %23, %24 : vector<2x8x8xf32>
    %26 = vector.shape_cast %11 : vector<8x8xf32> to vector<1x8x8xf32>
    %27 = vector.broadcast %26 : vector<1x8x8xf32> to vector<2x8x8xf32>
    %28 = arith.addf %25, %27 : vector<2x8x8xf32>
    %cst_16 = arith.constant dense<0xFF800000> : vector<2x8xf32>
    %29 = vector.multi_reduction <maximumf>, %28, %cst_16 [2] : vector<2x8x8xf32> to vector<2x8xf32>
    %30 = vector.shape_cast %29 : vector<2x8xf32> to vector<2x8x1xf32>
    %31 = vector.broadcast %30 : vector<2x8x1xf32> to vector<2x8x8xf32>
    %32 = arith.subf %28, %31 : vector<2x8x8xf32>
    %33 = math.exp %32 : vector<2x8x8xf32>
    %cst_17 = arith.constant dense<0.000000e+00> : vector<2x8xf32>
    %34 = vector.multi_reduction <add>, %33, %cst_17 [2] : vector<2x8x8xf32> to vector<2x8xf32>
    %35 = vector.shape_cast %34 : vector<2x8xf32> to vector<2x8x1xf32>
    %36 = tpu.reciprocal %35 {approx = true} : vector<2x8x1xf32> -> vector<2x8x1xf32>
    %37 = vector.broadcast %36 : vector<2x8x1xf32> to vector<2x8x8xf32>
    %38 = arith.mulf %33, %37 : vector<2x8x8xf32>
    "tpu.trace_start"() <{level = 10 : i32, message = "bij,bjc->bic"}> : () -> ()
    %cst_18 = arith.constant dense<0.000000e+00> : vector<2x8x4xf32>
    %39 = tpu.matmul %38, %22, %cst_18 {dimension_numbers = #tpu.dot_dimension_numbers<[2], [1], [1], [2], [0, 0, 0, 1, 1, 2], [0], [0]>} : vector<2x8x8xf32>, vector<2x8x4xf32>, vector<2x8x4xf32> -> vector<2x8x4xf32>
    "tpu.trace_stop"() : () -> ()
    %40 = arith.subf %39, %22 : vector<2x8x4xf32>
    %41 = vector.shape_cast %40 : vector<2x8x4xf32> to vector<16x4xf32>
    %c0_19 = arith.constant 0 : index
    %c0_20 = arith.constant 0 : index
    %c0_21 = arith.constant 0 : index
    %42 = vector.load %arg4[%c0_19, %c0_20, %c0_21] : memref<3x4x32xf32, #tpu.memory_space<vmem>>, vector<1x4x32xf32>
    %43 = vector.shape_cast %42 : vector<1x4x32xf32> to vector<4x32xf32>
    %cst_22 = arith.constant dense<0.000000e+00> : vector<16x32xf32>
    %44 = tpu.matmul %41, %43, %cst_22 {dimension_numbers = #tpu.dot_dimension_numbers<[1], [0], [0], [1], [0, 0, 1, 1], [], []>} : vector<16x4xf32>, vector<4x32xf32>, vector<16x32xf32> -> vector<16x32xf32>
    %45 = arith.addf %16, %44 : vector<16x32xf32>
    %46 = vector.extract_strided_slice %5 {offsets = [0, 4], sizes = [16, 4], strides = [1, 1]} : vector<16x36xf32> to vector<16x4xf32>
    %47 = vector.shape_cast %46 : vector<16x4xf32> to vector<2x8x4xf32>
    %48 = vector.extract_strided_slice %5 {offsets = [0, 16], sizes = [16, 4], strides = [1, 1]} : vector<16x36xf32> to vector<16x4xf32>
    %49 = vector.shape_cast %48 : vector<16x4xf32> to vector<2x8x4xf32>
    %50 = vector.extract_strided_slice %5 {offsets = [0, 28], sizes = [16, 4], strides = [1, 1]} : vector<16x36xf32> to vector<16x4xf32>
    %51 = vector.shape_cast %50 : vector<16x4xf32> to vector<2x8x4xf32>
    "tpu.trace_start"() <{level = 10 : i32, message = "bic,bjc->bij"}> : () -> ()
    %cst_23 = arith.constant dense<0.000000e+00> : vector<2x8x8xf32>
    %52 = tpu.matmul %47, %49, %cst_23 {dimension_numbers = #tpu.dot_dimension_numbers<[2], [2], [1], [1], [0, 0, 0, 1, 1, 1], [0], [0]>} : vector<2x8x4xf32>, vector<2x8x4xf32>, vector<2x8x8xf32> -> vector<2x8x8xf32>
    "tpu.trace_stop"() : () -> ()
    %cst_24 = arith.constant 5.000000e-01 : f32
    %53 = vector.broadcast %cst_24 : f32 to vector<2x8x8xf32>
    %54 = arith.mulf %52, %53 : vector<2x8x8xf32>
    %55 = vector.shape_cast %11 : vector<8x8xf32> to vector<1x8x8xf32>
    %56 = vector.broadcast %55 : vector<1x8x8xf32> to vector<2x8x8xf32>
    %57 = arith.addf %54, %56 : vector<2x8x8xf32>
    %cst_25 = arith.constant dense<0xFF800000> : vector<2x8xf32>
    %58 = vector.multi_reduction <maximumf>, %57, %cst_25 [2] : vector<2x8x8xf32> to vector<2x8xf32>
    %59 = vector.shape_cast %58 : vector<2x8xf32> to vector<2x8x1xf32>
    %60 = vector.broadcast %59 : vector<2x8x1xf32> to vector<2x8x8xf32>
    %61 = arith.subf %57, %60 : vector<2x8x8xf32>
    %62 = math.exp %61 : vector<2x8x8xf32>
    %cst_26 = arith.constant dense<0.000000e+00> : vector<2x8xf32>
    %63 = vector.multi_reduction <add>, %62, %cst_26 [2] : vector<2x8x8xf32> to vector<2x8xf32>
    %64 = vector.shape_cast %63 : vector<2x8xf32> to vector<2x8x1xf32>
    %65 = tpu.reciprocal %64 {approx = true} : vector<2x8x1xf32> -> vector<2x8x1xf32>
    %66 = vector.broadcast %65 : vector<2x8x1xf32> to vector<2x8x8xf32>
    %67 = arith.mulf %62, %66 : vector<2x8x8xf32>
    "tpu.trace_start"() <{level = 10 : i32, message = "bij,bjc->bic"}> : () -> ()
    %cst_27 = arith.constant dense<0.000000e+00> : vector<2x8x4xf32>
    %68 = tpu.matmul %67, %51, %cst_27 {dimension_numbers = #tpu.dot_dimension_numbers<[2], [1], [1], [2], [0, 0, 0, 1, 1, 2], [0], [0]>} : vector<2x8x8xf32>, vector<2x8x4xf32>, vector<2x8x4xf32> -> vector<2x8x4xf32>
    "tpu.trace_stop"() : () -> ()
    %69 = arith.subf %68, %51 : vector<2x8x4xf32>
    %70 = vector.shape_cast %69 : vector<2x8x4xf32> to vector<16x4xf32>
    %c1 = arith.constant 1 : index
    %c0_28 = arith.constant 0 : index
    %c0_29 = arith.constant 0 : index
    %71 = vector.load %arg4[%c1, %c0_28, %c0_29] : memref<3x4x32xf32, #tpu.memory_space<vmem>>, vector<1x4x32xf32>
    %72 = vector.shape_cast %71 : vector<1x4x32xf32> to vector<4x32xf32>
    %cst_30 = arith.constant dense<0.000000e+00> : vector<16x32xf32>
    %73 = tpu.matmul %70, %72, %cst_30 {dimension_numbers = #tpu.dot_dimension_numbers<[1], [0], [0], [1], [0, 0, 1, 1], [], []>} : vector<16x4xf32>, vector<4x32xf32>, vector<16x32xf32> -> vector<16x32xf32>
    %74 = arith.addf %45, %73 : vector<16x32xf32>
    %75 = vector.extract_strided_slice %5 {offsets = [0, 8], sizes = [16, 4], strides = [1, 1]} : vector<16x36xf32> to vector<16x4xf32>
    %76 = vector.shape_cast %75 : vector<16x4xf32> to vector<2x8x4xf32>
    %77 = vector.extract_strided_slice %5 {offsets = [0, 20], sizes = [16, 4], strides = [1, 1]} : vector<16x36xf32> to vector<16x4xf32>
    %78 = vector.shape_cast %77 : vector<16x4xf32> to vector<2x8x4xf32>
    %79 = vector.extract_strided_slice %5 {offsets = [0, 32], sizes = [16, 4], strides = [1, 1]} : vector<16x36xf32> to vector<16x4xf32>
    %80 = vector.shape_cast %79 : vector<16x4xf32> to vector<2x8x4xf32>
    "tpu.trace_start"() <{level = 10 : i32, message = "bic,bjc->bij"}> : () -> ()
    %cst_31 = arith.constant dense<0.000000e+00> : vector<2x8x8xf32>
    %81 = tpu.matmul %76, %78, %cst_31 {dimension_numbers = #tpu.dot_dimension_numbers<[2], [2], [1], [1], [0, 0, 0, 1, 1, 1], [0], [0]>} : vector<2x8x4xf32>, vector<2x8x4xf32>, vector<2x8x8xf32> -> vector<2x8x8xf32>
    "tpu.trace_stop"() : () -> ()
    %cst_32 = arith.constant 5.000000e-01 : f32
    %82 = vector.broadcast %cst_32 : f32 to vector<2x8x8xf32>
    %83 = arith.mulf %81, %82 : vector<2x8x8xf32>
    %84 = vector.shape_cast %11 : vector<8x8xf32> to vector<1x8x8xf32>
    %85 = vector.broadcast %84 : vector<1x8x8xf32> to vector<2x8x8xf32>
    %86 = arith.addf %83, %85 : vector<2x8x8xf32>
    %cst_33 = arith.constant dense<0xFF800000> : vector<2x8xf32>
    %87 = vector.multi_reduction <maximumf>, %86, %cst_33 [2] : vector<2x8x8xf32> to vector<2x8xf32>
    %88 = vector.shape_cast %87 : vector<2x8xf32> to vector<2x8x1xf32>
    %89 = vector.broadcast %88 : vector<2x8x1xf32> to vector<2x8x8xf32>
    %90 = arith.subf %86, %89 : vector<2x8x8xf32>
    %91 = math.exp %90 : vector<2x8x8xf32>
    %cst_34 = arith.constant dense<0.000000e+00> : vector<2x8xf32>
    %92 = vector.multi_reduction <add>, %91, %cst_34 [2] : vector<2x8x8xf32> to vector<2x8xf32>
    %93 = vector.shape_cast %92 : vector<2x8xf32> to vector<2x8x1xf32>
    %94 = tpu.reciprocal %93 {approx = true} : vector<2x8x1xf32> -> vector<2x8x1xf32>
    %95 = vector.broadcast %94 : vector<2x8x1xf32> to vector<2x8x8xf32>
    %96 = arith.mulf %91, %95 : vector<2x8x8xf32>
    "tpu.trace_start"() <{level = 10 : i32, message = "bij,bjc->bic"}> : () -> ()
    %cst_35 = arith.constant dense<0.000000e+00> : vector<2x8x4xf32>
    %97 = tpu.matmul %96, %80, %cst_35 {dimension_numbers = #tpu.dot_dimension_numbers<[2], [1], [1], [2], [0, 0, 0, 1, 1, 2], [0], [0]>} : vector<2x8x8xf32>, vector<2x8x4xf32>, vector<2x8x4xf32> -> vector<2x8x4xf32>
    "tpu.trace_stop"() : () -> ()
    %98 = arith.subf %97, %80 : vector<2x8x4xf32>
    %99 = vector.shape_cast %98 : vector<2x8x4xf32> to vector<16x4xf32>
    %c2 = arith.constant 2 : index
    %c0_36 = arith.constant 0 : index
    %c0_37 = arith.constant 0 : index
    %100 = vector.load %arg4[%c2, %c0_36, %c0_37] : memref<3x4x32xf32, #tpu.memory_space<vmem>>, vector<1x4x32xf32>
    %101 = vector.shape_cast %100 : vector<1x4x32xf32> to vector<4x32xf32>
    %cst_38 = arith.constant dense<0.000000e+00> : vector<16x32xf32>
    %102 = tpu.matmul %99, %101, %cst_38 {dimension_numbers = #tpu.dot_dimension_numbers<[1], [0], [0], [1], [0, 0, 1, 1], [], []>} : vector<16x4xf32>, vector<4x32xf32>, vector<16x32xf32> -> vector<16x32xf32>
    %103 = arith.addf %74, %102 : vector<16x32xf32>
    %cst_39 = arith.constant 0.000000e+00 : f32
    %104 = vector.broadcast %cst_39 : f32 to vector<16x32xf32>
    %105 = arith.maximumf %103, %104 : vector<16x32xf32>
    %c0_40 = arith.constant 0 : index
    %c0_41 = arith.constant 0 : index
    %106 = vector.load %arg7[%c0_40, %c0_41] : memref<32x32xf32, #tpu.memory_space<vmem>>, vector<32x32xf32>
    %cst_42 = arith.constant dense<0.000000e+00> : vector<16x32xf32>
    %107 = tpu.matmul %105, %106, %cst_42 {dimension_numbers = #tpu.dot_dimension_numbers<[1], [0], [0], [1], [0, 0, 1, 1], [], []>} : vector<16x32xf32>, vector<32x32xf32>, vector<16x32xf32> -> vector<16x32xf32>
    %c0_43 = arith.constant 0 : index
    %c0_44 = arith.constant 0 : index
    %108 = vector.load %arg8[%c0_43, %c0_44] : memref<1x32xf32, #tpu.memory_space<vmem>>, vector<1x32xf32>
    %109 = vector.broadcast %108 : vector<1x32xf32> to vector<16x32xf32>
    %110 = arith.addf %107, %109 : vector<16x32xf32>
    %cst_45 = arith.constant 0.000000e+00 : f32
    %111 = vector.broadcast %cst_45 : f32 to vector<16x32xf32>
    %112 = arith.maximumf %110, %111 : vector<16x32xf32>
    %c0_46 = arith.constant 0 : index
    %c0_47 = arith.constant 0 : index
    %113 = vector.load %arg9[%c0_46, %c0_47] : memref<32x4xf32, #tpu.memory_space<vmem>>, vector<32x4xf32>
    %cst_48 = arith.constant dense<0.000000e+00> : vector<16x4xf32>
    %114 = tpu.matmul %112, %113, %cst_48 {dimension_numbers = #tpu.dot_dimension_numbers<[1], [0], [0], [1], [0, 0, 1, 1], [], []>} : vector<16x32xf32>, vector<32x4xf32>, vector<16x4xf32> -> vector<16x4xf32>
    %c0_49 = arith.constant 0 : index
    %c0_50 = arith.constant 0 : index
    %115 = vector.load %arg10[%c0_49, %c0_50] : memref<1x4xf32, #tpu.memory_space<vmem>>, vector<1x4xf32>
    %116 = vector.broadcast %115 : vector<1x4xf32> to vector<16x4xf32>
    %117 = arith.addf %114, %116 : vector<16x4xf32>
    %118 = math.tanh %117 : vector<16x4xf32>
    %119 = vector.extract_strided_slice %118 {offsets = [0, 0], sizes = [16, 2], strides = [1, 1]} : vector<16x4xf32> to vector<16x2xf32>
    %120 = vector.extract_strided_slice %118 {offsets = [0, 2], sizes = [16, 2], strides = [1, 1]} : vector<16x4xf32> to vector<16x2xf32>
    %cst_51 = arith.constant 1.000000e+00 : f32
    %121 = vector.broadcast %cst_51 : f32 to vector<16x2xf32>
    %122 = arith.addf %120, %121 : vector<16x2xf32>
    %cst_52 = arith.constant 1.100000e+01 : f32
    %123 = vector.broadcast %cst_52 : f32 to vector<16x2xf32>
    %124 = arith.mulf %123, %122 : vector<16x2xf32>
    %cst_53 = arith.constant -2.000000e+01 : f32
    %125 = vector.broadcast %cst_53 : f32 to vector<16x2xf32>
    %126 = arith.addf %125, %124 : vector<16x2xf32>
    %127 = math.exp %126 : vector<16x2xf32>
    %128 = arith.mulf %127, %3 : vector<16x2xf32>
    %129 = arith.addf %119, %128 : vector<16x2xf32>
    %130 = math.tanh %129 : vector<16x2xf32>
    %cst_54 = arith.constant -5.000000e-01 : f32
    %131 = vector.broadcast %cst_54 : f32 to vector<16x2xf32>
    %132 = arith.mulf %131, %3 : vector<16x2xf32>
    %133 = arith.mulf %132, %3 : vector<16x2xf32>
    %134 = arith.subf %133, %126 : vector<16x2xf32>
    %cst_55 = arith.constant 6.28318548 : f32
    %135 = math.log %cst_55 : f32
    %cst_56 = arith.constant 5.000000e-01 : f32
    %136 = arith.mulf %cst_56, %135 : f32
    %137 = vector.broadcast %136 : f32 to vector<16x2xf32>
    %138 = arith.subf %134, %137 : vector<16x2xf32>
    %139 = arith.mulf %130, %130 : vector<16x2xf32>
    %cst_57 = arith.constant 1.000000e+00 : f32
    %140 = vector.broadcast %cst_57 : f32 to vector<16x2xf32>
    %141 = arith.subf %140, %139 : vector<16x2xf32>
    %cst_58 = arith.constant 1.000000e-07 : f32
    %142 = vector.broadcast %cst_58 : f32 to vector<16x2xf32>
    %143 = arith.addf %141, %142 : vector<16x2xf32>
    %144 = math.log %143 : vector<16x2xf32>
    %145 = arith.subf %138, %144 : vector<16x2xf32>
    %cst_59 = arith.constant dense<0.000000e+00> : vector<16xf32>
    %146 = vector.multi_reduction <add>, %145, %cst_59 [1] : vector<16x2xf32> to vector<16xf32>
    %147 = vector.shape_cast %146 : vector<16xf32> to vector<16x1xf32>
    %148 = tpu.concatenate %130, %147 in 1 : vector<16x2xf32>, vector<16x1xf32> -> vector<16x3xf32>
    %149 = vector.shape_cast %148 : vector<16x3xf32> to vector<2x8x3xf32>
    %c0_60 = arith.constant 0 : index
    %c0_61 = arith.constant 0 : index
    %c0_62 = arith.constant 0 : index
    %150 = vector.load %arg11[%c0_60, %c0_61, %c0_62] : memref<2x8x3xf32, #tpu.memory_space<vmem>>, vector<2x8x3xf32>
    tpu.vector_store %arg11[%c0_60, %c0_61, %c0_62], %149 {strides = array<i32>} : memref<2x8x3xf32, #tpu.memory_space<vmem>>, vector<2x8x3xf32>,
    return
  }
  func.func @transform_0(%arg0: i32) -> (i32, i32, i32) {
    %c0_i32 = arith.constant 0 : i32
    %c0_i32_0 = arith.constant 0 : i32
    %c0_i32_1 = arith.constant 0 : i32
    return %arg0, %c0_i32, %c0_i32_0 : i32, i32, i32
  }
  func.func @transform_1(%arg0: i32) -> (i32, i32, i32) {
    %c0_i32 = arith.constant 0 : i32
    %c0_i32_0 = arith.constant 0 : i32
    %c0_i32_1 = arith.constant 0 : i32
    return %arg0, %c0_i32, %c0_i32_0 : i32, i32, i32
  }
  func.func @transform_2(%arg0: i32) -> (i32, i32) {
    %c0_i32 = arith.constant 0 : i32
    %c0_i32_0 = arith.constant 0 : i32
    %c0_i32_1 = arith.constant 0 : i32
    return %c0_i32, %c0_i32_0 : i32, i32
  }
  func.func @transform_3(%arg0: i32) -> (i32, i32, i32) {
    %c0_i32 = arith.constant 0 : i32
    %c0_i32_0 = arith.constant 0 : i32
    %c0_i32_1 = arith.constant 0 : i32
    %c0_i32_2 = arith.constant 0 : i32
    return %c0_i32, %c0_i32_0, %c0_i32_1 : i32, i32, i32
  }
  func.func @transform_4(%arg0: i32) -> (i32, i32) {
    %c0_i32 = arith.constant 0 : i32
    %c0_i32_0 = arith.constant 0 : i32
    %c0_i32_1 = arith.constant 0 : i32
    return %c0_i32, %c0_i32_0 : i32, i32
  }
  func.func @transform_5(%arg0: i32) -> (i32, i32) {
    %c0_i32 = arith.constant 0 : i32
    %c0_i32_0 = arith.constant 0 : i32
    %c0_i32_1 = arith.constant 0 : i32
    return %c0_i32, %c0_i32_0 : i32, i32
  }
  func.func @transform_6(%arg0: i32) -> (i32, i32) {
    %c0_i32 = arith.constant 0 : i32
    %c0_i32_0 = arith.constant 0 : i32
    %c0_i32_1 = arith.constant 0 : i32
    return %c0_i32, %c0_i32_0 : i32, i32
  }
  func.func @transform_7(%arg0: i32) -> (i32, i32) {
    %c0_i32 = arith.constant 0 : i32
    %c0_i32_0 = arith.constant 0 : i32
    %c0_i32_1 = arith.constant 0 : i32
    return %c0_i32, %c0_i32_0 : i32, i32
  }
  func.func @transform_8(%arg0: i32) -> (i32, i32) {
    %c0_i32 = arith.constant 0 : i32
    %c0_i32_0 = arith.constant 0 : i32
    %c0_i32_1 = arith.constant 0 : i32
    return %c0_i32, %c0_i32_0 : i32, i32
  }
  func.func @transform_9(%arg0: i32) -> (i32, i32) {
    %c0_i32 = arith.constant 0 : i32
    %c0_i32_0 = arith.constant 0 : i32
    %c0_i32_1 = arith.constant 0 : i32
    return %c0_i32, %c0_i32_0 : i32, i32
  }
  func.func @transform_10(%arg0: i32) -> (i32, i32, i32) {
    %c0_i32 = arith.constant 0 : i32
    %c0_i32_0 = arith.constant 0 : i32
    %c0_i32_1 = arith.constant 0 : i32
    return %arg0, %c0_i32, %c0_i32_0 : i32, i32, i32
  }
}

</mosaic_0001>

<bundles_post_ra>
// kernel: tpu_custom_call.1
= control target key start
LH: loop header
LB: loop body
LE: loop exit
PB: predicated region body
PF: predicated region fallthrough
CT: control target
= control target key end

     0   :  { %15 = vsyncpa [#allocation3], 0  ;;  %s1243_s0 = inlined_call_operand.vmem [shape: f32[2,8,16], index: 0, kind: input, shape index: {}]   ;;  %s1244_s1 = inlined_call_operand.vmem [shape: f32[2,8,2], index: 1, kind: input, shape index: {}]   ;;  %s1245_s2 = inlined_call_operand.hbm [shape: f32[16,36], index: 2, kind: input, shape index: {}]   ;;  %s1246_s3 = inlined_call_operand.hbm [shape: f32[3,4,32], index: 3, kind: input, shape index: {}]   ;;  %s1247_s4 = inlined_call_operand.hbm [shape: f32[16,32], index: 4, kind: input, shape index: {}]   ;;  %s1248_s5 = inlined_call_operand.vmem [shape: f32[1,32], index: 5, kind: input, shape index: {}]   ;;  %s1249_s6 = inlined_call_operand.vmem [shape: f32[32,32], index: 6, kind: input, shape index: {}]   ;;  %s1250_s7 = inlined_call_operand.vmem [shape: f32[1,32], index: 7, kind: input, shape index: {}]   ;;  %s1251_s8 = inlined_call_operand.vmem [shape: f32[32,4], index: 8, kind: input, shape index: {}]   ;;  %s1252_s9 = inlined_call_operand.vmem [shape: f32[1,4], index: 9, kind: input, shape index: {}]   ;;  %s1253_s10 = inlined_call_operand.vmem [shape: f32[2,8,3], index: 10, kind: output, shape index: {}]  }
   0x1   :  { %16 = vsyncpa [#allocation5], 0  ;;  %s38_s15 = sshll.u32 %s1246_s3, 4  ;;  %s1004_s16 = smov [#allocation4]   ;;  %s39_s15 = int_to_ptr.hbm [resolvable:$true] %s38_s15 }
   0x2   :  { %s40_s17 = sshll.u32 %s1004_s16, 4  ;;  %s25_s20 = sshll.u32 %s1245_s2, 4  ;;  %s41_s17 = int_to_ptr.vmem [resolvable:$true] %s40_s17  ;;  %s26_s20 = int_to_ptr.hbm [resolvable:$true] %s25_s20 }
   0x3   :  { %s1005_s21 = smov 64   ;;  %s1006_s22 = smov 4  }
   0x4   :  { %46 = dma.hbm_to_vmem [thread:$0]  %s39_s15, 192, %s41_s17, [#allocation5], %s1005_s21, %s1005_s21, %s1006_s22  }
   0x5   :  { %s1007_s23 = smov [#allocation2]   ;;  %s1008_s25 = smov 128  }
   0x6   :  { %s27_s24 = sshll.u32 %s1007_s23, 4  ;;  %s1009_s26 = smov 8   ;;  %s28_s24 = int_to_ptr.vmem [resolvable:$true] %s27_s24 }
   0x7   :  { %33 = dma.hbm_to_vmem [thread:$0]  %s26_s20, 256, %s28_s24, [#allocation3], %s1008_s25, %s1008_s25, %s1009_s26  }
   0x8   :  { %s51_s28 = sshll.u32 %s1247_s4, 4  ;;  %s1010_s29 = smov [#allocation6]   ;;  %s52_s28 = int_to_ptr.hbm [resolvable:$true] %s51_s28 }
   0x9   :  { %s53_s30 = sshll.u32 %s1010_s29, 4  ;;  %s54_s30 = int_to_ptr.vmem [resolvable:$true] %s53_s30 }
   0xa   :  { %59 = dma.hbm_to_vmem [thread:$0]  %s52_s28, 256, %s54_s30, [#allocation5], %s1008_s25, %s1008_s25, %s1009_s26  }
   0xb   :  { %1000 = dma.done.wait [#allocation3], 256  }
   0xc   :  { %1001 = vsyncadd [#allocation3], 4294967040 }
   0xd   :  { %1002 = dma.done.wait [#allocation5], 448  }
   0xe   :  { %1003 = vsyncadd [#allocation5], 4294966848  ;;  %v87_v0 = vld [vmem:[#allocation2 + $0x8] sm:$0xff]  ;;  %v86_v1 = vld [vmem:[#allocation2] sm:$0xff]  ;;  %vm88_vm0 = vcmask 130048   ;;  %s1011_s13 = smov 112   ;;  %v118_v12 = vlaneseq }
   0xf   :  { %109 = vmatpush.msra.mxu0 %v87_v0  ;;  %865 = vmatpush.msra.mxu3 %v87_v0  ;;  %v82_v2 = vld [vmem:[%s1243_s0] sm:$0xff]  ;;  %v83_v3 = vld [vmem:[%s1243_s0 + $0x8] sm:$0xff]  ;;  %s1012_s14 = smov 116   ;;  %s1013_s0 = smov 124   ;;  %vm156_vm1 = vcmask 31744   ;;  %v1014_v16 = vmov 0.0  }
  0x10   :  { %v125_v4 = vld [vmem:[#allocation6 + $0x8] sm:$0xff]  ;;  %v124_v5 = vld [vmem:[#allocation6] sm:$0xff]  ;;  %v119_v13 = vshrl.u32 %v118_v12, 7  ;;  %v121_v14 = vand.u32 127, %v118_v12  ;;  %vm212_vm3 = vcmask 64512   ;;  %s1015_s15 = smov 104  }
  0x11   :  { %110 = vmatpush.msra.mxu0 %v86_v1  ;;  %866 = vmatpush.msra.mxu3 %v86_v1  ;;  %s1016_s16 = smov 120   ;;  %s1017_s17 = smov 108   ;;  %v289_v52 = vld [vmem:[#allocation4] sm:$0xf]  ;;  %vm296_vm4 = vcmask 1043456   ;;  %vm679_vm5 = vcmask 261120  }
  0x12   :  { %828 = vmatmul.msk.f32.vlgmr.msra.gmra.mxu0 %vm88_vm0, %v82_v2  ;;  %829 = vmatmul.msk.f32.vlgmr.msra.gmra.mxu3 %vm88_vm0, %v83_v3  ;;  %vm122_vm2 = vcmp.eq.s32.totalorder %v119_v13, %v121_v14  ;;  %s1018_s18 = smov 100   ;;  %vm810_vm6 = vcmask 15360   ;;  %vm819_vm7 = vcmask 23552  }
  0x13   :  { %144 = vmatpush.msra.mxu1 %v125_v4  ;;  %v1110_v17 = vsel %vm122_vm2, -1e+30, %v1014_v16  ;;  %838 = vmatpush.msk.msrb.mxu0 %vm296_vm4, %v289_v52 }
  0x15   :  { %145 = vmatpush.msra.mxu1 %v124_v5 }
  0x16   :  { %830 = vmatmul.msk.f32.vlgmr.msra.gmra.mxu1 %vm88_vm0, %v82_v2 }
  0x1e   :  { %831 = vmatmul.msk.f32.gmra.mxu1 %vm88_vm0, %v83_v3 }
  0x8f   :  { %v1092_v6 = vpop.f32.mrf.mxu0 }
  0x90   :  { %327 = vrot.lane.b32.xlu1 %v1092_v6, %s1011_s13  ;;  %154 = vrot.lane.b32.xlu0 %v1092_v6, %s1012_s14 }
  0x93   :  { %v1118_v25 = vpop.f32.mrf.mxu1 }
  0x95   :  { %v1097_v7 = vpop.f32.mrf.mxu3 }
  0x98   :  { %325 = vrot.lane.b32.xlu1 %v1092_v6, %s1013_s0  ;;  %182 = vrot.lane.b32.xlu0 %v1097_v7, %s1012_s14 }
  0x9b   :  { %v1120_v26 = vpop.f32.mrf.mxu1 }
 0x102   :  { %v328_v8 = vpop.permute.xlu1 %327  ;;  %v155_v9 = vpop.permute.xlu0 %154 }
 0x103   :  { %832 = vmatpush.xpose.msk.msra.mxu2 %vm156_vm1, %v155_v9  ;;  %841 = vmatpush.xpose.msk.msrb.mxu1 %vm156_vm1, %v328_v8 }
 0x106   :  { %833 = vmatmul.msk.f32.vlgmr.msra.gmra.mxu2 %vm156_vm1, %v1092_v6 }
 0x10a   :  { %v326_v10 = vpop.permute.xlu1 %325  ;;  %v183_v11 = vpop.permute.xlu0 %182 }
 0x10b   :  { %834 = vmatpush.xpose.msk.msrb.mxu3 %vm156_vm1, %v183_v11  ;;  %842 = vmatmul.msk.f32.vlgmr.msrb.gmra.mxu1 %vm156_vm1, %v326_v10  ;;  %v462_v11 = vld [vmem:[#allocation4 + $0x4] sm:$0xf] }
 0x10e   :  { %835 = vmatmul.msk.f32.vlgmr.msrb.gmra.mxu3 %vm156_vm1, %v1097_v7 }
 0x188   :  { %v350_v27 = vpop.f32.mrf.mxu1 }
 0x189   :  { %v178_v15 = vpop.f32.mrf.mxu2  ;;  %v381_v28 = vmul.f32 0.5, %v350_v27 }
 0x18a   :  { %v208_v18 = vmul.f32 0.5, %v178_v15 }
 0x18b   :  { %v383_v29 = vadd.f32 %v381_v28, %v1110_v17 }
 0x18c   :  { %v210_v19 = vadd.f32 %v208_v18, %v1110_v17 }
 0x18d   :  { %v385_v30 = vsel %vm212_vm3, %v383_v29, -inf }
 0x18e   :  { %v213_v20 = vsel %vm212_vm3, %v210_v19, -inf }
 0x18f   :  { %214 = vmax.xlane.f32.xlu2 %v213_v20 }
 0x191   :  { %v205_v21 = vpop.f32.mrf.mxu3 }
 0x192   :  { %v209_v22 = vmul.f32 0.5, %v205_v21 }
 0x194   :  { %v211_v23 = vadd.f32 %v209_v22, %v1110_v17 }
 0x196   :  { %v216_v24 = vsel %vm212_vm3, %v211_v23, -inf }
 0x197   :  { %217 = vmax.xlane.f32.xlu2 %v216_v24 }
 0x1af   :  { %235 = vrot.lane.b32.xlu2 %v1092_v6, %s1015_s15 }
 0x1b7   :  { %261 = vrot.lane.b32.xlu2 %v1097_v7, %s1015_s15 }
 0x1e0   :  { %386 = vmax.xlane.f32.xlu2 %v385_v30 }
 0x1f8   :  { %497 = vrot.lane.b32.xlu2 %v1092_v6, %s1016_s16 }
 0x202   :  { %v215_v31 = vpop.xlane.xlu2 %214 }
 0x203   :  { %v219_v32 = vsub.f32 %v210_v19, %v215_v31  ;;  %v1160_v19 = vld [vmem:[%s1248_s5] ss:$0 sm:$0xff]  ;;  %s1019_s5 = smov 96  }
 0x204   :  { %v148_v20 = vadd.f32 %v1160_v19, %v1118_v25 }
 0x205   :  { %v221_v33 = vmul.f32 1.442695, %v219_v32 }
 0x207   :  { %888 = vpow2.f32 %v221_v33 }
 0x20a   :  { %v218_v34 = vpop.xlane.xlu2 %217 }
 0x20b   :  { %v220_v35 = vsub.f32 %v211_v23, %v218_v34 }
 0x20d   :  { %v889_v36 = vpop.eup %888  ;;  %v223_v37 = vmul.f32 1.442695, %v220_v35 }
 0x20e   :  { %v225_v38 = vsel %vm212_vm3, %v889_v36, 0.0 }
 0x20f   :  { %890 = vpow2.f32 %v223_v37  ;;  %226 = vadd.xlane.f32.xlu0 %v225_v38 }
 0x212   :  { %v236_v39 = vpop.permute.xlu2 %235 }
 0x213   :  { %256 = vmatpush.msrb.mxu2 %v236_v39 }
 0x215   :  { %v891_v40 = vpop.eup %890 }
 0x216   :  { %v228_v41 = vsel %vm212_vm3, %v891_v40, 0.0 }
 0x217   :  { %229 = vadd.xlane.f32.xlu1 %v228_v41 }
 0x21a   :  { %v262_v42 = vpop.permute.xlu2 %261 }
 0x21b   :  { %282 = vmatpush.msra.mxu3 %v262_v42 }
 0x230   :  { %355 = vrot.lane.b32.xlu1 %v1097_v7, %s1011_s13 }
 0x238   :  { %353 = vrot.lane.b32.xlu1 %v1097_v7, %s1013_s0  ;;  %s1020_s0 = smov 2  }
 0x240   :  { %527 = vrot.lane.b32.xlu1 %v1097_v7, %s1017_s17 }
 0x253   :  { %v387_v43 = vpop.xlane.xlu2 %386 }
 0x254   :  { %v391_v44 = vsub.f32 %v383_v29, %v387_v43 }
 0x256   :  { %v393_v45 = vmul.f32 1.442695, %v391_v44 }
 0x258   :  { %892 = vpow2.f32 %v393_v45 }
 0x25b   :  { %v498_v63 = vpop.permute.xlu2 %497 }
 0x25e   :  { %v893_v46 = vpop.eup %892 }
 0x25f   :  { %v397_v47 = vsel %vm212_vm3, %v893_v46, 0.0 }
 0x260   :  { %398 = vadd.xlane.f32.xlu0 %v397_v47 }
 0x274   :  { %407 = vrot.lane.b32.xlu0 %v1092_v6, %s1018_s18 }
 0x27c   :  { %499 = vrot.lane.b32.xlu0 %v1092_v6, %s1017_s17 }
 0x282   :  { %v227_v48 = vpop.xlane.xlu0 %226 }
 0x283   :  { %894 = vrcp.f32 %v227_v48 }
 0x284   :  { %525 = vrot.lane.b32.xlu0 %v1097_v7, %s1016_s16 }
 0x289   :  { %v895_v49 = vpop.eup %894 }
 0x28a   :  { %v230_v50 = vpop.xlane.xlu1 %229  ;;  %v233_v51 = vmul.f32 %v895_v49, %v889_v36 }
 0x28b   :  { %896 = vrcp.f32 %v230_v50 }
 0x28c   :  { %836 = vmatmul.msk.f32.vlgmr.msrb.gmra.mxu2 %vm212_vm3, %v233_v51 }
 0x291   :  { %v897_v53 = vpop.eup %896 }
 0x292   :  { %v234_v54 = vmul.f32 %v897_v53, %v891_v40 }
 0x294   :  { %837 = vmatmul.msk.f32.vlgmr.msra.gmra.mxu3 %vm212_vm3, %v234_v54 }
 0x2a2   :  { %v356_v55 = vpop.permute.xlu1 %355 }
 0x2a3   :  { %843 = vmatpush.xpose.msk.msra.mxu2 %vm156_vm1, %v356_v55  ;;  %v634_v55 = vld [vmem:[#allocation4 + $0x8] sm:$0xf] }
 0x2a7   :  { %847 = vmatpush.msk.msrb.mxu2 %vm296_vm4, %v462_v11 }
 0x2aa   :  { %v354_v56 = vpop.permute.xlu1 %353 }
 0x2ab   :  { %844 = vmatmul.msk.f32.vlgmr.msra.gmra.mxu2 %vm156_vm1, %v354_v56 }
 0x2b2   :  { %v528_v57 = vpop.permute.xlu1 %527 }
 0x2b3   :  { %852 = vmatpush.xpose.msk.msra.mxu0 %vm156_vm1, %v528_v57 }
 0x2d3   :  { %v399_v58 = vpop.xlane.xlu0 %398 }
 0x2d4   :  { %898 = vrcp.f32 %v399_v58  ;;  %v674_v58 = vld [vmem:[%s1249_s6 + $0x18] sm:$0xff] }
 0x2da   :  { %v899_v59 = vpop.eup %898 }
 0x2db   :  { %v405_v60 = vmul.f32 %v899_v59, %v893_v46 }
 0x2e6   :  { %v408_v61 = vpop.permute.xlu0 %407 }
 0x2e7   :  { %428 = vmatpush.msrb.mxu3 %v408_v61 }
 0x2e8   :  { %845 = vmatmul.msk.f32.vlgmr.msrb.gmra.mxu3 %vm212_vm3, %v405_v60 }
 0x2ee   :  { %v500_v62 = vpop.permute.xlu0 %499 }
 0x2ef   :  { %850 = vmatpush.xpose.msk.msra.mxu3 %vm156_vm1, %v500_v62  ;;  %v672_v62 = vld [vmem:[%s1249_s6 + $0x8] sm:$0xff] }
 0x2f2   :  { %851 = vmatmul.msk.f32.vlgmr.msra.gmra.mxu3 %vm156_vm1, %v498_v63  ;;  %v671_v63 = vld [vmem:[%s1249_s6] sm:$0xff] }
 0x2f6   :  { %v526_v4 = vpop.permute.xlu0 %525 }
 0x30f   :  { %v258_v0 = vpop.f32.mrf.mxu2 }
 0x310   :  { %v287_v1 = vsub.f32 %v258_v0, %v236_v39 }
 0x312   :  { %839 = vmatmul.msk.f32.vlgmr.msrb.gmra.mxu0 %vm156_vm1, %v287_v1 }
 0x313   :  { %856 = vmatpush.msk.msrb.mxu0 %vm296_vm4, %v634_v55 }
 0x317   :  { %v284_v2 = vpop.f32.mrf.mxu3 }
 0x318   :  { %v288_v3 = vsub.f32 %v284_v2, %v262_v42 }
 0x31a   :  { %840 = vmatmul.msk.f32.gmra.mxu0 %vm156_vm1, %v288_v3 }
 0x322   :  { %853 = vmatmul.msk.f32.vlgmr.msra.gmra.mxu0 %vm156_vm1, %v526_v4 }
 0x32e   :  { %v378_v5 = vpop.f32.mrf.mxu2 }
 0x32f   :  { %v382_v8 = vmul.f32 0.5, %v378_v5  ;;  %v714_v5 = vld [vmem:[%s1251_s8 + $0x18] sm:$0xff] }
 0x330   :  { %737 = vmatpush.msra.mxu2 %v714_v5 }
 0x331   :  { %v384_v9 = vadd.f32 %v382_v8, %v1110_v17  ;;  %v151_v8 = vadd.f32 %v1160_v19, %v1120_v26  ;;  %v711_v26 = vld [vmem:[%s1251_s8] sm:$0xff] }
 0x332   :  { %v886_v19 = vld [vmem:[%s1250_s7] ss:$0 sm:$0xff] }
 0x333   :  { %v388_v10 = vsel %vm212_vm3, %v384_v9, -inf }
 0x334   :  { %389 = vmax.xlane.f32.xlu1 %v388_v10 }
 0x36b   :  { %v430_v12 = vpop.f32.mrf.mxu3 }
 0x36c   :  { %v459_v13 = vsub.f32 %v430_v12, %v408_v61  ;;  %v673_v61 = vld [vmem:[%s1249_s6 + $0x10] sm:$0xff] }
 0x36e   :  { %848 = vmatmul.msk.f32.vlgmr.msrb.gmra.mxu2 %vm156_vm1, %v459_v13 }
 0x375   :  { %v522_v14 = vpop.f32.mrf.mxu3 }
 0x376   :  { %v553_v15 = vmul.f32 0.5, %v522_v14 }
 0x378   :  { %v555_v16 = vadd.f32 %v553_v15, %v1110_v17  ;;  %v713_v15 = vld [vmem:[%s1251_s8 + $0x10] sm:$0xff] }
 0x379   :  { %738 = vmatpush.msra.mxu2 %v713_v15 }
 0x37a   :  { %v557_v18 = vsel %vm212_vm3, %v555_v16, -inf }
 0x37b   :  { %558 = vmax.xlane.f32.xlu0 %v557_v18  ;;  %v84_v18 = vld [vmem:[%s1244_s1] sm:$0xff] }
 0x38f   :  { %v317_v21 = vpop.f32.mrf.mxu0 }
 0x390   :  { %v1164_v22 = vadd.f32 %v317_v21, %v148_v20 }
 0x397   :  { %v1166_v23 = vpop.f32.mrf.mxu0 }
 0x398   :  { %v324_v10 = vadd.f32 %v1166_v23, %v151_v8  ;;  %v1224_v23 = vld [vmem:[%s1244_s1 + $0x8] sm:$0xff]  ;;  %s1021_s1 = smov 126  }
 0x39f   :  { %v550_v24 = vpop.f32.mrf.mxu0 }
 0x3a0   :  { %v554_v27 = vmul.f32 0.5, %v550_v24 }
 0x3a2   :  { %v556_v28 = vadd.f32 %v554_v27, %v1110_v17 }
 0x3a4   :  { %v560_v29 = vsel %vm212_vm3, %v556_v28, -inf }
 0x3a5   :  { %561 = vmax.xlane.f32.xlu2 %v560_v29  ;;  %v887_v29 = vld [vmem:[%s1252_s9] ss:$0 sm:$0xff] }
 0x3a7   :  { %v390_v30 = vpop.xlane.xlu1 %389 }
 0x3a8   :  { %v392_v31 = vsub.f32 %v384_v9, %v390_v30 }
 0x3aa   :  { %v395_v32 = vmul.f32 1.442695, %v392_v31 }
 0x3ac   :  { %900 = vpow2.f32 %v395_v32 }
 0x3b2   :  { %v901_v33 = vpop.eup %900 }
 0x3b3   :  { %v400_v34 = vsel %vm212_vm3, %v901_v33, 0.0 }
 0x3b4   :  { %401 = vadd.xlane.f32.xlu1 %v400_v34 }
 0x3bd   :  { %579 = vrot.lane.b32.xlu2 %v1092_v6, %s1019_s5 }
 0x3c5   :  { %764 = vrot.lane.b32.xlu2 %v1224_v23, %s1020_s0 }
 0x3cd   :  { %433 = vrot.lane.b32.xlu1 %v1097_v7, %s1018_s18 }
 0x3d5   :  { %762 = vrot.lane.b32.xlu1 %v84_v18, %s1020_s0 }
 0x3ee   :  { %v559_v25 = vpop.xlane.xlu0 %558 }
 0x3ef   :  { %v563_v35 = vsub.f32 %v555_v16, %v559_v25  ;;  %v712_v16 = vld [vmem:[%s1251_s8 + $0x8] sm:$0xff] }
 0x3f0   :  { %739 = vmatpush.msra.mxu2 %v712_v16 }
 0x3f1   :  { %v565_v17 = vmul.f32 1.442695, %v563_v35  ;;  %v489_v0 = vpop.f32.mrf.mxu2 }
 0x3f2   :  { %v495_v1 = vadd.f32 %v489_v0, %v1164_v22  ;;  %740 = vmatpush.msra.mxu2 %v711_v26 }
 0x3f3   :  { %902 = vpow2.f32 %v565_v17 }
 0x3f9   :  { %v903_v36 = vpop.eup %902 }
 0x3fa   :  { %v569_v37 = vsel %vm212_vm3, %v903_v36, 0.0 }
 0x3fb   :  { %570 = vadd.xlane.f32.xlu0 %v569_v37 }
 0x418   :  { %v562_v38 = vpop.xlane.xlu2 %561 }
 0x419   :  { %v564_v39 = vsub.f32 %v556_v28, %v562_v38 }
 0x41b   :  { %v567_v40 = vmul.f32 1.442695, %v564_v39 }
 0x41d   :  { %904 = vpow2.f32 %v567_v40 }
 0x420   :  { %v580_v46 = vpop.permute.xlu2 %579 }
 0x423   :  { %v905_v41 = vpop.eup %904 }
 0x424   :  { %v572_v42 = vsel %vm212_vm3, %v905_v41, 0.0 }
 0x425   :  { %573 = vadd.xlane.f32.xlu0 %v572_v42 }
 0x427   :  { %v402_v6 = vpop.xlane.xlu1 %401 }
 0x428   :  { %906 = vrcp.f32 %v402_v6 }
 0x42e   :  { %v907_v43 = vpop.eup %906 }
 0x42f   :  { %v406_v44 = vmul.f32 %v907_v43, %v901_v33 }
 0x439   :  { %605 = vrot.lane.b32.xlu0 %v1097_v7, %s1019_s5 }
 0x43f   :  { %v434_v45 = vpop.permute.xlu1 %433 }
 0x440   :  { %454 = vmatpush.msra.mxu1 %v434_v45 }
 0x441   :  { %846 = vmatmul.msk.f32.vlgmr.msra.gmra.mxu1 %vm212_vm3, %v406_v44  ;;  %v765_v44 = vpop.permute.xlu2 %764 }
 0x442   :  { %600 = vmatpush.msrb.mxu1 %v580_v46 }
 0x444   :  { %698 = vmatpush.msra.mxu1 %v674_v58 }
 0x446   :  { %699 = vmatpush.msra.mxu1 %v673_v61 }
 0x447   :  { %v763_v17 = vpop.permute.xlu1 %762 }
 0x448   :  { %700 = vmatpush.msra.mxu1 %v672_v62 }
 0x44a   :  { %701 = vmatpush.msra.mxu1 %v671_v63 }
 0x46e   :  { %v571_v47 = vpop.xlane.xlu0 %570 }
 0x46f   :  { %908 = vrcp.f32 %v571_v47 }
 0x475   :  { %v909_v48 = vpop.eup %908 }
 0x476   :  { %v577_v49 = vmul.f32 %v909_v48, %v903_v36 }
 0x478   :  { %854 = vmatmul.msk.f32.vlgmr.msrb.gmra.mxu1 %vm212_vm3, %v577_v49 }
 0x498   :  { %v574_v50 = vpop.xlane.xlu0 %573 }
 0x499   :  { %910 = vrcp.f32 %v574_v50 }
 0x49f   :  { %v911_v51 = vpop.eup %910 }
 0x4a0   :  { %v578_v52 = vmul.f32 %v911_v51, %v905_v41  ;;  %v782_v51 = vmul.f32 -0.5, %v84_v18 }
 0x4ab   :  { %v606_v53 = vpop.permute.xlu0 %605 }
 0x4ac   :  { %626 = vmatpush.msrb.mxu3 %v606_v53 }
 0x4ad   :  { %855 = vmatmul.msk.f32.vlgmr.msrb.gmra.mxu3 %vm212_vm3, %v578_v52 }
 0x4be   :  { %v456_v7 = vpop.f32.mrf.mxu1 }
 0x4bf   :  { %v460_v54 = vsub.f32 %v456_v7, %v434_v45  ;;  %v784_v7 = vmul.f32 %v782_v51, %v84_v18 }
 0x4c1   :  { %849 = vmatmul.msk.f32.gmra.mxu2 %vm156_vm1, %v460_v54 }
 0x4f5   :  { %v602_v56 = vpop.f32.mrf.mxu1 }
 0x4f6   :  { %v631_v57 = vsub.f32 %v602_v56, %v580_v46 }
 0x4f8   :  { %857 = vmatmul.msk.f32.vlgmr.msrb.gmra.mxu0 %vm156_vm1, %v631_v57 }
 0x530   :  { %v628_v59 = vpop.f32.mrf.mxu3 }
 0x531   :  { %v632_v60 = vsub.f32 %v628_v59, %v606_v53 }
 0x533   :  { %858 = vmatmul.msk.f32.gmra.mxu0 %vm156_vm1, %v632_v60 }
 0x544   :  { %v492_v9 = vpop.f32.mrf.mxu2 }
 0x545   :  { %v496_v11 = vadd.f32 %v492_v9, %v324_v10 }
 0x575   :  { %v661_v2 = vpop.f32.mrf.mxu0 }
 0x576   :  { %v667_v3 = vadd.f32 %v661_v2, %v495_v1  ;;  %v783_v1 = vmul.f32 -0.5, %v1224_v23 }
 0x578   :  { %v669_v4 = vmax.f32 %v667_v3, 0.0 }
 0x57a   :  { %859 = vmatmul.msk.f32.vlgmr.msra.gmra.mxu1 %vm679_vm5, %v669_v4  ;;  %v785_v4 = vmul.f32 %v783_v1, %v1224_v23 }
 0x5b0   :  { %v664_v12 = vpop.f32.mrf.mxu0 }
 0x5b1   :  { %v668_v13 = vadd.f32 %v664_v12, %v496_v11 }
 0x5b3   :  { %v670_v14 = vmax.f32 %v668_v13, 0.0 }
 0x5b5   :  { %860 = vmatmul.msk.f32.gmra.mxu1 %vm679_vm5, %v670_v14 }
 0x5f7   :  { %v703_v20 = vpop.f32.mrf.mxu1 }
 0x5f8   :  { %v704_v21 = vadd.f32 %v886_v19, %v703_v20 }
 0x5fa   :  { %v709_v22 = vmax.f32 %v704_v21, 0.0 }
 0x5fc   :  { %861 = vmatmul.msk.f32.vlgmr.msra.gmra.mxu2 %vm679_vm5, %v709_v22 }
 0x632   :  { %v706_v24 = vpop.f32.mrf.mxu1 }
 0x633   :  { %v707_v27 = vadd.f32 %v886_v19, %v706_v24 }
 0x635   :  { %v710_v28 = vmax.f32 %v707_v27, 0.0 }
 0x637   :  { %862 = vmatmul.msk.f32.gmra.mxu2 %vm679_vm5, %v710_v28 }
 0x67f   :  { %v742_v30 = vpop.f32.mrf.mxu2 }
 0x680   :  { %v743_v31 = vadd.f32 %v887_v29, %v742_v30 }
 0x682   :  { %912 = vtanh.f32 %v743_v31 }
 0x688   :  { %v913_v32 = vpop.eup %912 }
 0x689   :  { %v750_v33 = vadd.f32 1.0, %v913_v32 }
 0x68b   :  { %v752_v34 = vmul.f32 11.0, %v750_v33 }
 0x68d   :  { %v754_v25 = vadd.f32 -20.0, %v752_v34 }
 0x68f   :  { %788 = vrot.lane.b32.xlu2 %v754_v25, %s1021_s1  ;;  %v756_v35 = vmul.f32 1.442695, %v754_v25 }
 0x691   :  { %914 = vpow2.f32 %v756_v35 }
 0x697   :  { %v915_v36 = vpop.eup %914 }
 0x698   :  { %v768_v37 = vmul.f32 %v915_v36, %v763_v17 }
 0x69a   :  { %772 = vrot.lane.b32.xlu0 %v768_v37, %s1021_s1 }
 0x6ba   :  { %v745_v38 = vpop.f32.mrf.mxu2 }
 0x6bb   :  { %v746_v39 = vadd.f32 %v887_v29, %v745_v38 }
 0x6bd   :  { %916 = vtanh.f32 %v746_v39 }
 0x6c3   :  { %v917_v40 = vpop.eup %916 }
 0x6c4   :  { %v751_v41 = vadd.f32 1.0, %v917_v40 }
 0x6c6   :  { %v753_v42 = vmul.f32 11.0, %v751_v41 }
 0x6c8   :  { %v755_v6 = vadd.f32 -20.0, %v753_v42 }
 0x6ca   :  { %790 = vrot.lane.b32.xlu0 %v755_v6, %s1021_s1  ;;  %v758_v43 = vmul.f32 1.442695, %v755_v6 }
 0x6cc   :  { %918 = vpow2.f32 %v758_v43 }
 0x6d2   :  { %v919_v45 = vpop.eup %918 }
 0x6d3   :  { %v769_v46 = vmul.f32 %v919_v45, %v765_v44 }
 0x6d5   :  { %774 = vrot.lane.b32.xlu1 %v769_v46, %s1021_s1 }
 0x6e9   :  { %v789_v54 = vpop.permute.xlu2 %788 }
 0x6ea   :  { %v794_v55 = vsub.f32 %v784_v7, %v789_v54 }
 0x6ec   :  { %v863_v57 = vadd.f32 -0.9189385, %v794_v55 }
 0x70c   :  { %v773_v47 = vpop.permute.xlu0 %772 }
 0x70d   :  { %v778_v48 = vadd.f32 %v913_v32, %v773_v47 }
 0x70f   :  { %920 = vtanh.f32 %v778_v48 }
 0x715   :  { %v921_v49 = vpop.eup %920 }
 0x716   :  { %v798_v50 = vmul.f32 %v921_v49, %v921_v49 }
 0x718   :  { %v800_v52 = vsub.f32 1.0, %v798_v50 }
 0x71a   :  { %v802_v53 = vadd.f32 1e-07, %v800_v52 }
 0x71c   :  { %922 = vlog2.f32 %v802_v53 }
 0x722   :  { %v923_v56 = vpop.eup %922 }
 0x723   :  { %v805_v58 = vmul.f32 0.6931472, %v923_v56 }
 0x725   :  { %v808_v59 = vsub.f32 %v863_v57, %v805_v58 }
 0x727   :  { %v811_v60 = vsel %vm810_vm6, %v808_v59, 0.0 }
 0x728   :  { %812 = vadd.xlane.f32.xlu1 %v811_v60 }
 0x73c   :  { %v791_v5 = vpop.permute.xlu0 %790 }
 0x73d   :  { %v795_v8 = vsub.f32 %v785_v4, %v791_v5 }
 0x73f   :  { %v864_v10 = vadd.f32 -0.9189385, %v795_v8 }
 0x747   :  { %v775_v61 = vpop.permute.xlu1 %774 }
 0x748   :  { %v779_v62 = vadd.f32 %v917_v40, %v775_v61 }
 0x74a   :  { %924 = vtanh.f32 %v779_v62 }
 0x750   :  { %v925_v63 = vpop.eup %924 }
 0x751   :  { %v799_v0 = vmul.f32 %v925_v63, %v925_v63 }
 0x753   :  { %v801_v2 = vsub.f32 1.0, %v799_v0 }
 0x755   :  { %v803_v3 = vadd.f32 1e-07, %v801_v2 }
 0x757   :  { %926 = vlog2.f32 %v803_v3 }
 0x75d   :  { %v927_v9 = vpop.eup %926 }
 0x75e   :  { %v807_v11 = vmul.f32 0.6931472, %v927_v9 }
 0x760   :  { %v809_v12 = vsub.f32 %v864_v10, %v807_v11 }
 0x762   :  { %v814_v13 = vsel %vm810_vm6, %v809_v12, 0.0 }
 0x763   :  { %815 = vadd.xlane.f32.xlu2 %v814_v13 }
 0x79b   :  { %v813_v14 = vpop.xlane.xlu1 %812 }
 0x79c   :  { %v817_v15 = vsel %vm810_vm6, %v921_v49, %v813_v14 }
 0x79d   :  { %820 = vst.msk [vmem:[%s1253_s10] sm:$0xff] %vm819_vm7, %v817_v15 }
 0x7d6   :  { %v816_v16 = vpop.xlane.xlu2 %815 }
 0x7d7   :  { %v818_v26 = vsel %vm810_vm6, %v925_v63, %v816_v16 }
 0x7d8   :  { %821 = vst.msk [vmem:[%s1253_s10 + $0x8] sm:$0xff] %vm819_vm7, %v818_v26 }
 0x7d9   :  { %826 = vsyncpa [#allocation3], 1 }
 0x7da   :  { %827 = vsyncpa [#allocation5], 1 }

</bundles_post_ra>
